<compile_context>
chip_gen: v7x
topology: tpu7x:2x2x1
jax: 0.10.0
libtpu: 0.0.40
codegen_flags: <defaults>
</compile_context>

<pallas_src>
import functools

import jax
import jax.numpy as jnp
from jax.experimental import pallas as pl
from jax.experimental.pallas import tpu as pltpu


# -----------------------------------------------------------------------------
# Fused kernel: conv (as one im2col matmul) + bias + PReLU + BatchNorm (batch
# statistics + affine), all on a lane-dense (F, N*H*W) layout.
# -----------------------------------------------------------------------------
def fused_conv_prelu_bn_kernel(patches_ref, w_ref, b_ref, a_ref,
                               gamma_ref, beta_ref, o_ref, *, count, eps):
    # Single deep-contraction matmul on the MXU:
    #   (F, Kp) x (Kp, N*H*W) -> (F, N*H*W), lane axis = N*H*W (dense).
    z = jnp.dot(w_ref[...], patches_ref[...],
                preferred_element_type=jnp.float32)
    z = z + b_ref[...]                      # (F, 1) bias, broadcast over lanes

    # PReLU with a single shared slope.
    a = a_ref[...]                          # (1, 1)
    y = jnp.where(z > 0, z, a * z)

    # BatchNorm2d, training mode: per-channel batch mean and *biased* variance,
    # computed two-pass for numerical stability (y stays resident).
    inv_n = jnp.float32(1.0 / count)
    mean = jnp.sum(y, axis=1, keepdims=True) * inv_n         # (F, 1)
    d = y - mean
    var = jnp.sum(d * d, axis=1, keepdims=True) * inv_n      # (F, 1) biased
    scale = gamma_ref[...] * jax.lax.rsqrt(var + eps)        # (F, 1)
    o_ref[...] = d * scale + beta_ref[...]                   # lane-dense store


def generic_block_forward(x_nchw, conv_w, conv_b, prelu_a, gamma, beta,
                          eps=1e-5):
    """Forward pass of GenericBlock (weights=None path)."""
    N, C, H, W = x_nchw.shape
    F_out, _, KH, KW = conv_w.shape
    ph, pw = (KH - 1) // 2, (KW - 1) // 2

    # ---- wrapper glue (fuses into one XLA op): pad + im2col + relayout ------
    x = x_nchw.astype(jnp.float32)
    x_pad = jnp.pad(x, ((0, 0), (0, 0), (ph, ph), (pw, pw)))
    # patches[(c, kh, kw), (n, h, w)] = x_pad[n, c, h + kh, w + kw]
    taps = [x_pad[:, :, kh:kh + H, kw:kw + W]
            for kh in range(KH) for kw in range(KW)]          # each (N,C,H,W)
    patches = jnp.stack(taps, axis=2)                         # (N, C, KH*KW, H, W)
    patches = patches.reshape(N, C * KH * KW, H * W)
    patches = jnp.transpose(patches, (1, 0, 2)).reshape(C * KH * KW, N * H * W)

    K = C * KH * KW
    M = N * H * W
    Kp = ((K + 127) // 128) * 128                 # pad contraction to 128-align
    patches = jnp.pad(patches, ((0, Kp - K), (0, 0)))

    w2d = conv_w.reshape(F_out, K).astype(jnp.float32)        # (F, C*KH*KW)
    w2d = jnp.pad(w2d, ((0, 0), (0, Kp - K)))
    bias = conv_b.reshape(F_out, 1).astype(jnp.float32)
    a = jnp.asarray(prelu_a, jnp.float32).reshape(1, 1)
    g = gamma.reshape(F_out, 1).astype(jnp.float32)
    bt = beta.reshape(F_out, 1).astype(jnp.float32)

    # ---- single fused pallas_call, whole batch in one grid step -------------
    out_flat = pl.pallas_call(
        functools.partial(fused_conv_prelu_bn_kernel,
                          count=float(M), eps=float(eps)),
        out_shape=jax.ShapeDtypeStruct((F_out, M), jnp.float32),
        grid=(1,),
        in_specs=[
            pl.BlockSpec((Kp, M), lambda i: (0, 0)),          # im2col patches
            pl.BlockSpec((F_out, Kp), lambda i: (0, 0)),      # conv weight
            pl.BlockSpec((F_out, 1), lambda i: (0, 0)),       # conv bias
            pl.BlockSpec((1, 1), lambda i: (0, 0)),           # PReLU slope
            pl.BlockSpec((F_out, 1), lambda i: (0, 0)),       # BN gamma
            pl.BlockSpec((F_out, 1), lambda i: (0, 0)),       # BN beta
        ],
        out_specs=pl.BlockSpec((F_out, M), lambda i: (0, 0)),
        compiler_params=pltpu.CompilerParams(
            dimension_semantics=("arbitrary",)),
    )(patches, w2d, bias, a, g, bt)

    # (F, N*H*W) -> (N, F, H, W)  (NCHW, matching the PyTorch module)
    return jnp.transpose(out_flat.reshape(F_out, N, H, W), (1, 0, 2, 3))


# -----------------------------------------------------------------------------
# Pure-JAX reference for correctness checking.
# -----------------------------------------------------------------------------
def reference_forward(x, w, b, a, gamma, beta, eps=1e-5):
    out = jax.lax.conv_general_dilated(
        x, w, window_strides=(1, 1),
        padding=((2, 2), (2, 2)),
        dimension_numbers=("NCHW", "OIHW", "NCHW"))
    out = out + b.reshape(1, -1, 1, 1)
    out = jnp.where(out > 0, out, a * out)
    mean = out.mean(axis=(0, 2, 3), keepdims=True)
    var = out.var(axis=(0, 2, 3), keepdims=True)     # biased
    return (gamma.reshape(1, -1, 1, 1) * (out - mean)
            / jnp.sqrt(var + eps) + beta.reshape(1, -1, 1, 1))


if __name__ == "__main__":
    # params = {'kernel_h': 5, 'kernel_w': 5, 'num_channels': 4,
    #           'num_filters': 8, 'stride_conv': 1, 'drop_out': 0}
    N, C, H, W = 2, 4, 16, 16
    F_out, KH, KW = 8, 5, 5

    key = jax.random.PRNGKey(0)
    kx, kw, kb = jax.random.split(key, 3)
    x = jax.random.normal(kx, (N, C, H, W), dtype=jnp.float32)
    conv_w = 0.1 * jax.random.normal(kw, (F_out, C, KH, KW), dtype=jnp.float32)
    conv_b = 0.1 * jax.random.normal(kb, (F_out,), dtype=jnp.float32)
    prelu_a = jnp.float32(0.25)                    # nn.PReLU() default init
    gamma = jnp.ones((F_out,), jnp.float32)        # BatchNorm2d affine defaults
    beta = jnp.zeros((F_out,), jnp.float32)

    out = generic_block_forward(x, conv_w, conv_b, prelu_a, gamma, beta)
    out = jax.block_until_ready(out)

    ref = reference_forward(x, conv_w, conv_b, prelu_a, gamma, beta)
    assert out.shape == (N, F_out, H, W)
    assert jnp.allclose(out, ref, rtol=1e-4, atol=1e-4), \
        float(jnp.max(jnp.abs(out - ref)))

    print("KERNEL_OK")
</pallas_src>

<mosaic_0001>
module attributes {stable_mosaic.version = 11 : i64} {
  func.func @fused_conv_prelu_bn_kernel(%arg0: i32, %arg1: memref<128x512xf32, #tpu.memory_space<vmem>>, %arg2: memref<8x128xf32, #tpu.memory_space<vmem>>, %arg3: memref<8x1xf32, #tpu.memory_space<vmem>>, %arg4: memref<1x1xf32, #tpu.memory_space<vmem>>, %arg5: memref<8x1xf32, #tpu.memory_space<vmem>>, %arg6: memref<8x1xf32, #tpu.memory_space<vmem>>, %arg7: memref<8x512xf32, #tpu.memory_space<vmem>>) attributes {dimension_semantics = [#tpu.dimension_semantics<arbitrary>], iteration_bounds = array<i64: 1>, scalar_prefetch = 0 : i64, scratch_operands = 0 : i64, tpu.core_type = #tpu.core_type<tc>, window_params = [{pipeline_mode = #tpu.pipeline_mode<synchronous>, transform_indices = @transform_0, window_bounds = array<i64: 128, 512>}, {pipeline_mode = #tpu.pipeline_mode<synchronous>, transform_indices = @transform_1, window_bounds = array<i64: 8, 128>}, {pipeline_mode = #tpu.pipeline_mode<synchronous>, transform_indices = @transform_2, window_bounds = array<i64: 8, 1>}, {pipeline_mode = #tpu.pipeline_mode<synchronous>, transform_indices = @transform_3, window_bounds = array<i64: 1, 1>}, {pipeline_mode = #tpu.pipeline_mode<synchronous>, transform_indices = @transform_4, window_bounds = array<i64: 8, 1>}, {pipeline_mode = #tpu.pipeline_mode<synchronous>, transform_indices = @transform_5, window_bounds = array<i64: 8, 1>}, {pipeline_mode = #tpu.pipeline_mode<synchronous>, transform_indices = @transform_6, window_bounds = array<i64: 8, 512>}]} {
    %c0 = arith.constant 0 : index
    %c0_0 = arith.constant 0 : index
    %0 = vector.load %arg2[%c0, %c0_0] : memref<8x128xf32, #tpu.memory_space<vmem>>, vector<8x128xf32>
    %c0_1 = arith.constant 0 : index
    %c0_2 = arith.constant 0 : index
    %1 = vector.load %arg1[%c0_1, %c0_2] : memref<128x512xf32, #tpu.memory_space<vmem>>, vector<128x512xf32>
    %cst = arith.constant dense<0.000000e+00> : vector<8x512xf32>
    %2 = tpu.matmul %0, %1, %cst {dimension_numbers = #tpu.dot_dimension_numbers<[1], [0], [0], [1], [0, 0, 1, 1], [], []>} : vector<8x128xf32>, vector<128x512xf32>, vector<8x512xf32> -> vector<8x512xf32>
    %c0_3 = arith.constant 0 : index
    %c0_4 = arith.constant 0 : index
    %3 = vector.load %arg3[%c0_3, %c0_4] : memref<8x1xf32, #tpu.memory_space<vmem>>, vector<8x1xf32>
    %4 = vector.broadcast %3 : vector<8x1xf32> to vector<8x512xf32>
    %5 = arith.addf %2, %4 : vector<8x512xf32>
    %c0_5 = arith.constant 0 : index
    %c0_6 = arith.constant 0 : index
    %6 = vector.load %arg4[%c0_5, %c0_6] : memref<1x1xf32, #tpu.memory_space<vmem>>, vector<1x1xf32>
    %cst_7 = arith.constant 0.000000e+00 : f32
    %7 = vector.broadcast %cst_7 : f32 to vector<8x512xf32>
    %8 = arith.cmpf ogt, %5, %7 : vector<8x512xf32>
    %9 = vector.broadcast %6 : vector<1x1xf32> to vector<8x512xf32>
    %10 = arith.mulf %9, %5 : vector<8x512xf32>
    %11 = arith.select %8, %5, %10 : vector<8x512xi1>, vector<8x512xf32>
    %cst_8 = arith.constant dense<0.000000e+00> : vector<8xf32>
    %12 = vector.multi_reduction <add>, %11, %cst_8 [1] : vector<8x512xf32> to vector<8xf32>
    %13 = vector.shape_cast %12 : vector<8xf32> to vector<8x1xf32>
    %cst_9 = arith.constant 0.001953125 : f32
    %14 = vector.broadcast %cst_9 : f32 to vector<8x1xf32>
    %15 = arith.mulf %13, %14 : vector<8x1xf32>
    %16 = vector.broadcast %15 : vector<8x1xf32> to vector<8x512xf32>
    %17 = arith.subf %11, %16 : vector<8x512xf32>
    %18 = arith.mulf %17, %17 : vector<8x512xf32>
    %cst_10 = arith.constant dense<0.000000e+00> : vector<8xf32>
    %19 = vector.multi_reduction <add>, %18, %cst_10 [1] : vector<8x512xf32> to vector<8xf32>
    %20 = vector.shape_cast %19 : vector<8xf32> to vector<8x1xf32>
    %cst_11 = arith.constant 0.001953125 : f32
    %21 = vector.broadcast %cst_11 : f32 to vector<8x1xf32>
    %22 = arith.mulf %20, %21 : vector<8x1xf32>
    %c0_12 = arith.constant 0 : index
    %c0_13 = arith.constant 0 : index
    %23 = vector.load %arg5[%c0_12, %c0_13] : memref<8x1xf32, #tpu.memory_space<vmem>>, vector<8x1xf32>
    %cst_14 = arith.constant 9.99999974E-6 : f32
    %24 = vector.broadcast %cst_14 : f32 to vector<8x1xf32>
    %25 = arith.addf %22, %24 : vector<8x1xf32>
    %26 = math.rsqrt %25 : vector<8x1xf32>
    %27 = arith.mulf %23, %26 : vector<8x1xf32>
    %28 = vector.broadcast %27 : vector<8x1xf32> to vector<8x512xf32>
    %29 = arith.mulf %17, %28 : vector<8x512xf32>
    %c0_15 = arith.constant 0 : index
    %c0_16 = arith.constant 0 : index
    %30 = vector.load %arg6[%c0_15, %c0_16] : memref<8x1xf32, #tpu.memory_space<vmem>>, vector<8x1xf32>
    %31 = vector.broadcast %30 : vector<8x1xf32> to vector<8x512xf32>
    %32 = arith.addf %29, %31 : vector<8x512xf32>
    %c0_17 = arith.constant 0 : index
    %c0_18 = arith.constant 0 : index
    %33 = vector.load %arg7[%c0_17, %c0_18] : memref<8x512xf32, #tpu.memory_space<vmem>>, vector<8x512xf32>
    tpu.vector_store %arg7[%c0_17, %c0_18], %32 {strides = array<i32>} : memref<8x512xf32, #tpu.memory_space<vmem>>, vector<8x512xf32>,
    return
  }
  func.func @transform_0(%arg0: i32) -> (i32, i32) {
    %c0_i32 = arith.constant 0 : i32
    %c0_i32_0 = arith.constant 0 : i32
    %c0_i32_1 = arith.constant 0 : i32
    return %c0_i32, %c0_i32_0 : i32, i32
  }
  func.func @transform_1(%arg0: i32) -> (i32, i32) {
    %c0_i32 = arith.constant 0 : i32
    %c0_i32_0 = arith.constant 0 : i32
    %c0_i32_1 = arith.constant 0 : i32
    return %c0_i32, %c0_i32_0 : i32, i32
  }
  func.func @transform_2(%arg0: i32) -> (i32, i32) {
    %c0_i32 = arith.constant 0 : i32
    %c0_i32_0 = arith.constant 0 : i32
    %c0_i32_1 = arith.constant 0 : i32
    return %c0_i32, %c0_i32_0 : i32, i32
  }
  func.func @transform_3(%arg0: i32) -> (i32, i32) {
    %c0_i32 = arith.constant 0 : i32
    %c0_i32_0 = arith.constant 0 : i32
    %c0_i32_1 = arith.constant 0 : i32
    return %c0_i32, %c0_i32_0 : i32, i32
  }
  func.func @transform_4(%arg0: i32) -> (i32, i32) {
    %c0_i32 = arith.constant 0 : i32
    %c0_i32_0 = arith.constant 0 : i32
    %c0_i32_1 = arith.constant 0 : i32
    return %c0_i32, %c0_i32_0 : i32, i32
  }
  func.func @transform_5(%arg0: i32) -> (i32, i32) {
    %c0_i32 = arith.constant 0 : i32
    %c0_i32_0 = arith.constant 0 : i32
    %c0_i32_1 = arith.constant 0 : i32
    return %c0_i32, %c0_i32_0 : i32, i32
  }
  func.func @transform_6(%arg0: i32) -> (i32, i32) {
    %c0_i32 = arith.constant 0 : i32
    %c0_i32_0 = arith.constant 0 : i32
    %c0_i32_1 = arith.constant 0 : i32
    return %c0_i32, %c0_i32_0 : i32, i32
  }
}

</mosaic_0001>

<bundles_post_ra>
// kernel: tpu_custom_call.1
= control target key start
LH: loop header
LB: loop body
LE: loop exit
PB: predicated region body
PF: predicated region fallthrough
CT: control target
= control target key end

     0   :  { %s540_s0 = inlined_call_operand.hbm [shape: f32[128,512], index: 0, kind: input, shape index: {}]   ;;  %s541_s1 = inlined_call_operand.vmem [shape: f32[8,128], index: 1, kind: input, shape index: {}]   ;;  %s542_s2 = inlined_call_operand.vmem [shape: f32[8,1], index: 2, kind: input, shape index: {}]   ;;  %s543_s3 = inlined_call_operand.<no memory space> [shape: f32[1,1], index: 3, kind: input, shape index: {}]   ;;  %s544_s4 = inlined_call_operand.vmem [shape: f32[8,1], index: 4, kind: input, shape index: {}]   ;;  %s545_s5 = inlined_call_operand.vmem [shape: f32[8,1], index: 5, kind: input, shape index: {}]   ;;  %s546_s6 = inlined_call_operand.hbm [shape: f32[8,512], index: 6, kind: output, shape index: {}]  }
   0x1   :  { %v11_v0 = vstv %s543_s3 }
   0x2   :  { %12 = vst [vmem:[#allocation2] sm:$0x1] %v11_v0 }
   0x3   :  { %13 = vsyncpa [#allocation4], 0 }
   0x4   :  { %14 = vsyncpa [#allocation5], 0  ;;  %s460_s23 = smov [#allocation3]   ;;  %s412_s27 = scalar_lea.hbm %s540_s0, 8192 }
   0x5   :  { %s20_s24 = sshll.u32 %s460_s23, 4  ;;  %p413_p0 = scmp.ne.s32.totalorder %s540_s0, %s412_s27  ;;  %s21_s24 = int_to_ptr.vmem [resolvable:$true] %s20_s24 }
   0x6   :  { %p416_p1 = scmp.lt.u32.totalorder %s412_s27, %s540_s0 }
   0x8   :  { %p418_p2 = pnand %p416_p1, %p413_p0 }
   0xa   :  { %421 = shalt.err (!%p418_p2)
}
   0xb   :  { %s422_s3 = scalar_lea.vmem %s21_s24, 8192  ;;  %p427_p4 = scmp.lt.s32.totalorder %s21_s24, %s21_s24 }
   0xc   :  { %p423_p3 = scmp.ne.s32.totalorder %s21_s24, %s422_s3  ;;  %p428_p5 = scmp.lt.s32.totalorder %s422_s3, %s422_s3 }
   0xe   :  { %p429_p6 = por %p428_p5, %p427_p4 }
  0x10   :  { %p430_p7 = pnand %p429_p6, %p423_p3 }
  0x12   :  { %433 = shalt.err (!%p430_p7)
}
  0x13   :  { %s461_s8 = smov 512   ;;  %s462_s9 = smov 32  }
  0x14   :  { %26 = dma.hbm_to_vmem [thread:$0]  %s540_s0, 8192, %s21_s24, [#allocation4], %s461_s8, %s461_s8, %s462_s9  }
  0x15   :  { %456 = dma.done.wait [#allocation4], 8192  }
  0x16   :  { %457 = vsyncadd [#allocation4], 4294959104  ;;  %v463_v1 = vmov 0.0   ;;  %v464_v2 = vmov 0   ;;  %v42_v3 = vld [vmem:[#allocation3 + $0x8] sm:$0xff]  ;;  %v44_v5 = vld [vmem:[#allocation3 + $0x18] sm:$0xff] }
  0x17   :  { %175 = vmatprep.mubr.f32.mxu0 %v463_v1  ;;  %246 = vmatprep.mubr.f32.mxu1 %v463_v1  ;;  %v46_v4 = vld [vmem:[#allocation3 + $0x28] sm:$0xff]  ;;  %v48_v7 = vld [vmem:[#allocation3 + $0x38] sm:$0xff]  ;;  %v41_v8 = vld [vmem:[#allocation3] sm:$0xff]  ;;  %s465_s17 = smov [#allocation6]  }
  0x18   :  { %408 = vset.pattern.permute.xlu0 %v464_v2  ;;  %409 = vset.pattern.permute.xlu1 %v464_v2  ;;  %v338_v6 = vpack.c.bf16 %v46_v4, %v42_v3  ;;  %v45_v9 = vld [vmem:[#allocation3 + $0x20] sm:$0xff]  ;;  %v370_v10 = vpack.c.bf16 %v48_v7, %v44_v5  ;;  %v43_v12 = vld [vmem:[#allocation3 + $0x10] sm:$0xff]  ;;  %v50_v14 = vld [vmem:[#allocation3 + $0x48] sm:$0xff]  ;;  %s328_s18 = sshll.u32 %s465_s17, 4  ;;  %s329_s18 = int_to_ptr.vmem [resolvable:$true] %s328_s18 }
  0x19   :  { %v340_v11 = vpack.c.bf16 %v45_v9, %v41_v8  ;;  %v47_v13 = vld [vmem:[#allocation3 + $0x30] sm:$0xff]  ;;  %v54_v16 = vld [vmem:[#allocation3 + $0x68] sm:$0xff]  ;;  %v52_v17 = vld [vmem:[#allocation3 + $0x58] sm:$0xff]  ;;  %p439_p9 = scmp.lt.s32.totalorder %s329_s18, %s329_s18 }
  0x1a   :  { %339 = vmatprep.subr.bf16.mxu0 %v338_v6  ;;  %v372_v15 = vpack.c.bf16 %v47_v13, %v43_v12  ;;  %v56_v18 = vld [vmem:[#allocation3 + $0x78] sm:$0xff]  ;;  %371 = vmatprep.subr.bf16.mxu1 %v370_v10  ;;  %v342_v19 = vpack.c.bf16 %v54_v16, %v50_v14  ;;  %v49_v21 = vld [vmem:[#allocation3 + $0x40] sm:$0xff]  ;;  %v51_v23 = vld [vmem:[#allocation3 + $0x50] sm:$0xff] }
  0x1b   :  { %341 = vmatpush1.bf16.msra.mxu0 %v340_v11  ;;  %v374_v20 = vpack.c.bf16 %v56_v18, %v52_v17  ;;  %v53_v22 = vld [vmem:[#allocation3 + $0x60] sm:$0xff]  ;;  %v55_v25 = vld [vmem:[#allocation3 + $0x70] sm:$0xff]  ;;  %v58_v26 = vld [vmem:[#allocation3 + $0x88] sm:$0xff] }
  0x1c   :  { %373 = vmatpush1.bf16.msra.mxu1 %v372_v15  ;;  %v344_v24 = vpack.c.bf16 %v53_v22, %v49_v21  ;;  %v62_v27 = vld [vmem:[#allocation3 + $0xa8] sm:$0xff]  ;;  %343 = vmatprep.subr.bf16.mxu0 %v342_v19  ;;  %v376_v28 = vpack.c.bf16 %v55_v25, %v51_v23  ;;  %v60_v30 = vld [vmem:[#allocation3 + $0x98] sm:$0xff]  ;;  %v57_v32 = vld [vmem:[#allocation3 + $0x80] sm:$0xff] }
  0x1d   :  { %375 = vmatprep.subr.bf16.mxu1 %v374_v20  ;;  %v346_v29 = vpack.c.bf16 %v62_v27, %v58_v26  ;;  %v64_v31 = vld [vmem:[#allocation3 + $0xb8] sm:$0xff]  ;;  %v61_v34 = vld [vmem:[#allocation3 + $0xa0] sm:$0xff]  ;;  %v59_v35 = vld [vmem:[#allocation3 + $0x90] sm:$0xff] }
  0x1e   :  { %v378_v33 = vpack.c.bf16 %v64_v31, %v60_v30  ;;  %v63_v36 = vld [vmem:[#allocation3 + $0xb0] sm:$0xff]  ;;  %v348_v37 = vpack.c.bf16 %v61_v34, %v57_v32  ;;  %v66_v38 = vld [vmem:[#allocation3 + $0xc8] sm:$0xff]  ;;  %v68_v40 = vld [vmem:[#allocation3 + $0xd8] sm:$0xff] }
  0x1f   :  { %345 = vmatpush1.bf16.msra.mxu0 %v344_v24  ;;  %v70_v39 = vld [vmem:[#allocation3 + $0xe8] sm:$0xff]  ;;  %v380_v41 = vpack.c.bf16 %v63_v36, %v59_v35  ;;  %v72_v43 = vld [vmem:[#allocation3 + $0xf8] sm:$0xff]  ;;  %v65_v44 = vld [vmem:[#allocation3 + $0xc0] sm:$0xff] }
  0x20   :  { %377 = vmatpush1.bf16.msra.mxu1 %v376_v28  ;;  %347 = vmatprep.subr.bf16.mxu0 %v346_v29  ;;  %v350_v42 = vpack.c.bf16 %v70_v39, %v66_v38  ;;  %v69_v45 = vld [vmem:[#allocation3 + $0xe0] sm:$0xff]  ;;  %v382_v46 = vpack.c.bf16 %v72_v43, %v68_v40  ;;  %v67_v47 = vld [vmem:[#allocation3 + $0xd0] sm:$0xff]  ;;  %v74_v49 = vld [vmem:[#allocation3 + $0x108] sm:$0xff] }
  0x21   :  { %379 = vmatprep.subr.bf16.mxu1 %v378_v33  ;;  %v71_v48 = vld [vmem:[#allocation3 + $0xf0] sm:$0xff]  ;;  %v78_v50 = vld [vmem:[#allocation3 + $0x128] sm:$0xff]  ;;  %v76_v51 = vld [vmem:[#allocation3 + $0x118] sm:$0xff]  ;;  %v352_v53 = vpack.c.bf16 %v69_v45, %v65_v44 }
  0x22   :  { %v80_v52 = vld [vmem:[#allocation3 + $0x138] sm:$0xff]  ;;  %v384_v54 = vpack.c.bf16 %v71_v48, %v67_v47  ;;  %v354_v55 = vpack.c.bf16 %v78_v50, %v74_v49  ;;  %v73_v56 = vld [vmem:[#allocation3 + $0x100] sm:$0xff]  ;;  %v75_v58 = vld [vmem:[#allocation3 + $0x110] sm:$0xff] }
  0x23   :  { %349 = vmatpush1.bf16.msra.mxu0 %v348_v37  ;;  %v77_v57 = vld [vmem:[#allocation3 + $0x120] sm:$0xff]  ;;  %v386_v59 = vpack.c.bf16 %v80_v52, %v76_v51  ;;  %v79_v60 = vld [vmem:[#allocation3 + $0x130] sm:$0xff]  ;;  %v82_v61 = vld [vmem:[#allocation3 + $0x148] sm:$0xff] }
  0x24   :  { %381 = vmatpush1.bf16.msra.mxu1 %v380_v41  ;;  %351 = vmatprep.subr.bf16.mxu0 %v350_v42  ;;  %v86_v62 = vld [vmem:[#allocation3 + $0x168] sm:$0xff]  ;;  %v84_v63 = vld [vmem:[#allocation3 + $0x158] sm:$0xff]  ;;  %v356_v1 = vpack.c.bf16 %v77_v57, %v73_v56  ;;  %v388_v2 = vpack.c.bf16 %v79_v60, %v75_v58  ;;  %v81_v4 = vld [vmem:[#allocation3 + $0x140] sm:$0xff] }
  0x25   :  { %383 = vmatprep.subr.bf16.mxu1 %v382_v46  ;;  %v88_v0 = vld [vmem:[#allocation3 + $0x178] sm:$0xff]  ;;  %v358_v3 = vpack.c.bf16 %v86_v62, %v82_v61  ;;  %v85_v5 = vld [vmem:[#allocation3 + $0x160] sm:$0xff]  ;;  %v83_v6 = vld [vmem:[#allocation3 + $0x150] sm:$0xff] }
  0x26   :  { %v390_v7 = vpack.c.bf16 %v88_v0, %v84_v63  ;;  %v87_v8 = vld [vmem:[#allocation3 + $0x170] sm:$0xff]  ;;  %v90_v9 = vld [vmem:[#allocation3 + $0x188] sm:$0xff]  ;;  %v92_v11 = vld [vmem:[#allocation3 + $0x198] sm:$0xff]  ;;  %v360_v13 = vpack.c.bf16 %v85_v5, %v81_v4 }
  0x27   :  { %353 = vmatpush1.bf16.msra.mxu0 %v352_v53  ;;  %v94_v10 = vld [vmem:[#allocation3 + $0x1a8] sm:$0xff]  ;;  %v96_v12 = vld [vmem:[#allocation3 + $0x1b8] sm:$0xff]  ;;  %v89_v14 = vld [vmem:[#allocation3 + $0x180] sm:$0xff]  ;;  %v392_v15 = vpack.c.bf16 %v87_v8, %v83_v6 }
  0x28   :  { %385 = vmatpush1.bf16.msra.mxu1 %v384_v54  ;;  %355 = vmatprep.subr.bf16.mxu0 %v354_v55  ;;  %v362_v16 = vpack.c.bf16 %v94_v10, %v90_v9  ;;  %v93_v17 = vld [vmem:[#allocation3 + $0x1a0] sm:$0xff]  ;;  %v91_v18 = vld [vmem:[#allocation3 + $0x190] sm:$0xff]  ;;  %v394_v20 = vpack.c.bf16 %v96_v12, %v92_v11  ;;  %v98_v22 = vld [vmem:[#allocation3 + $0x1c8] sm:$0xff] }
  0x29   :  { %387 = vmatprep.subr.bf16.mxu1 %v386_v59  ;;  %v105_v19 = vld [vmem:[%s542_s2] sm:$0xff]  ;;  %v95_v21 = vld [vmem:[#allocation3 + $0x1b0] sm:$0xff]  ;;  %v102_v23 = vld [vmem:[#allocation3 + $0x1e8] sm:$0xff]  ;;  %v364_v27 = vpack.c.bf16 %v93_v17, %v89_v14 }
  0x2a   :  { %108 = vperm.xlu0 %408, %v105_v19   ;;  %v100_v24 = vld [vmem:[#allocation3 + $0x1d8] sm:$0xff]  ;;  %v396_v28 = vpack.c.bf16 %v95_v21, %v91_v18  ;;  %v366_v29 = vpack.c.bf16 %v102_v23, %v98_v22  ;;  %v97_v30 = vld [vmem:[#allocation3 + $0x1c0] sm:$0xff]  ;;  %v99_v33 = vld [vmem:[#allocation3 + $0x1d0] sm:$0xff] }
  0x2b   :  { %357 = vmatpush1.bf16.msra.mxu0 %v356_v1  ;;  %v104_v25 = vld [vmem:[#allocation3 + $0x1f8] sm:$0xff]  ;;  %v101_v31 = vld [vmem:[#allocation3 + $0x1e0] sm:$0xff]  ;;  %v103_v34 = vld [vmem:[#allocation3 + $0x1f0] sm:$0xff] }
  0x2c   :  { %389 = vmatpush1.bf16.msra.mxu1 %v388_v2  ;;  %359 = vmatprep.subr.bf16.mxu0 %v358_v3  ;;  %v337_v26 = vld [vmem:[#allocation2] ss:$0 sm:$0xff]  ;;  %v398_v32 = vpack.c.bf16 %v104_v25, %v100_v24  ;;  %v368_v35 = vpack.c.bf16 %v101_v31, %v97_v30  ;;  %v400_v36 = vpack.c.bf16 %v103_v34, %v99_v33 }
  0x2d   :  { %391 = vmatprep.subr.bf16.mxu1 %v390_v7  ;;  %v40_v37 = vld [vmem:[%s541_s1] sm:$0xff] }
  0x2e   :  { %264 = vperm.xlu0 %408, %v337_v26   ;;  %v308_v8 = vld [vmem:[%s545_s5] sm:$0xff] }
  0x2f   :  { %361 = vmatpush1.bf16.msra.mxu0 %v360_v13  ;;  %v295_v12 = vld [vmem:[%s544_s4] sm:$0xff]  ;;  %s434_s4 = scalar_lea.vmem %s329_s18, 512 }
  0x30   :  { %393 = vmatpush1.bf16.msra.mxu1 %v392_v15  ;;  %363 = vmatprep.subr.bf16.mxu0 %v362_v16  ;;  %p435_p8 = scmp.ne.s32.totalorder %s329_s18, %s434_s4  ;;  %p440_p10 = scmp.lt.s32.totalorder %s434_s4, %s434_s4 }
  0x31   :  { %395 = vmatprep.subr.bf16.mxu1 %v394_v20 }
  0x32   :  { %p441_p11 = por %p440_p10, %p439_p9 }
  0x33   :  { %365 = vmatpush1.bf16.msra.mxu0 %v364_v27 }
  0x34   :  { %397 = vmatpush1.bf16.msra.mxu1 %v396_v28  ;;  %367 = vmatprep.subr.bf16.mxu0 %v366_v29  ;;  %p442_p12 = pnand %p441_p11, %p435_p8 }
  0x35   :  { %399 = vmatprep.subr.bf16.mxu1 %v398_v32 }
  0x37   :  { %369 = vmatpush1.bf16.msra.mxu0 %v368_v35 }
  0x38   :  { %401 = vmatpush1.bf16.msra.mxu1 %v400_v36 }
  0x3a   :  { %176 = vmatmul.mubr.f32.vlgmr.msra.gmra.mrb[0].mxu0 %v40_v37 }
  0x3b   :  { %247 = vmatmul.mubr.f32.vlgmr.msra.gmra.mrb[0].mxu1 %v40_v37 }
  0xa9   :  { %v109_v38 = vpop.permute.xlu0 %108 }
  0xad   :  { %v265_v43 = vpop.permute.xlu0 %264 }
 0x10d   :  { %v177_v39 = vpop.f32.mrb[0].mxu0 }
 0x10e   :  { %v178_v40 = vadd.f32 %v177_v39, %v109_v38  ;;  %v248_v41 = vpop.f32.mrb[0].mxu1  ;;  %v179_v42 = vpop.f32.mrb[1].mxu0 }
 0x10f   :  { %v249_v44 = vadd.f32 %v248_v41, %v109_v38  ;;  %v180_v45 = vadd.f32 %v179_v42, %v109_v38  ;;  %v250_v46 = vpop.f32.mrb[1].mxu1 }
 0x110   :  { %vm254_vm0 = vcmp.gt.f32.partialorder %v178_v40, 0.0  ;;  %v267_v47 = vmul.f32 %v265_v43, %v178_v40  ;;  %v251_v48 = vadd.f32 %v250_v46, %v109_v38 }
 0x111   :  { %v269_v49 = vmul.f32 %v265_v43, %v249_v44  ;;  %vm255_vm1 = vcmp.gt.f32.partialorder %v180_v45, 0.0  ;;  %v268_v50 = vmul.f32 %v265_v43, %v180_v45  ;;  %vm256_vm2 = vcmp.gt.f32.partialorder %v249_v44, 0.0 }
 0x112   :  { %v271_v51 = vsel %vm254_vm0, %v178_v40, %v267_v47  ;;  %v270_v52 = vmul.f32 %v265_v43, %v251_v48  ;;  %vm257_vm3 = vcmp.gt.f32.partialorder %v251_v48, 0.0 }
 0x113   :  { %v272_v53 = vsel %vm255_vm1, %v180_v45, %v268_v50  ;;  %v273_v55 = vsel %vm256_vm2, %v249_v44, %v269_v49 }
 0x114   :  { %v275_v54 = vadd.f32 %v272_v53, %v271_v51  ;;  %v274_v57 = vsel %vm257_vm3, %v251_v48, %v270_v52 }
 0x116   :  { %v276_v56 = vadd.f32 %v275_v54, %v273_v55 }
 0x118   :  { %v277_v58 = vadd.f32 %v276_v56, %v274_v57 }
 0x11a   :  { %278 = vadd.xlane.f32.xlu1 %v277_v58 }
 0x1a7   :  { %v279_v59 = vpop.xlane.xlu1 %278 }
 0x1a8   :  { %v280_v60 = vmul.f32 0.001953125, %v279_v59 }
 0x1aa   :  { %v281_v61 = vsub.f32 %v271_v51, %v280_v60  ;;  %v282_v62 = vsub.f32 %v272_v53, %v280_v60  ;;  %v283_v63 = vsub.f32 %v273_v55, %v280_v60  ;;  %v284_v0 = vsub.f32 %v274_v57, %v280_v60 }
 0x1ac   :  { %v285_v1 = vmul.f32 %v281_v61, %v281_v61  ;;  %v286_v2 = vmul.f32 %v282_v62, %v282_v62  ;;  %v287_v3 = vmul.f32 %v283_v63, %v283_v63  ;;  %v288_v5 = vmul.f32 %v284_v0, %v284_v0 }
 0x1ae   :  { %v289_v4 = vadd.f32 %v286_v2, %v285_v1 }
 0x1b0   :  { %v290_v6 = vadd.f32 %v289_v4, %v287_v3 }
 0x1b2   :  { %v291_v7 = vadd.f32 %v290_v6, %v288_v5 }
 0x1b4   :  { %292 = vadd.xlane.f32.xlu1 %v291_v7 }
 0x1c5   :  { %311 = vperm.xlu1 %409, %v308_v8  }
 0x241   :  { %v293_v9 = vpop.xlane.xlu1 %292 }
 0x242   :  { %v294_v10 = vmul.f32 0.001953125, %v293_v9 }
 0x244   :  { %v296_v11 = vadd.f32 1e-05, %v294_v10 }
 0x245   :  { %v312_v16 = vpop.permute.xlu1 %311 }
 0x246   :  { %410 = vrsqrt.f32 %v296_v11 }
 0x250   :  { %v411_v13 = vpop.eup %410 }
 0x251   :  { %v298_v14 = vmul.f32 %v411_v13, %v295_v12 }
 0x253   :  { %301 = vperm.xlu0 %408, %v298_v14  }
 0x2d2   :  { %v302_v15 = vpop.permute.xlu0 %301 }
 0x2d3   :  { %v304_v17 = vmul.f32 %v302_v15, %v281_v61  ;;  %v305_v18 = vmul.f32 %v302_v15, %v282_v62  ;;  %v306_v19 = vmul.f32 %v302_v15, %v283_v63  ;;  %v307_v20 = vmul.f32 %v302_v15, %v284_v0 }
 0x2d5   :  { %v314_v21 = vadd.f32 %v312_v16, %v304_v17  ;;  %v315_v22 = vadd.f32 %v312_v16, %v305_v18  ;;  %v316_v23 = vadd.f32 %v312_v16, %v306_v19  ;;  %v317_v24 = vadd.f32 %v312_v16, %v307_v20 }
 0x2d7   :  { %318 = vst [vmem:[#allocation6] sm:$0xff] %v314_v21  ;;  %319 = vst [vmem:[#allocation6 + $0x8] sm:$0xff] %v315_v22 }
 0x2d8   :  { %320 = vst [vmem:[#allocation6 + $0x10] sm:$0xff] %v316_v23  ;;  %321 = vst [vmem:[#allocation6 + $0x18] sm:$0xff] %v317_v24 }
 0x2d9   :  { %445 = shalt.err (!%p442_p12)
}
 0x2da   :  { %s446_s20 = scalar_lea.hbm %s546_s6, 512 }
 0x2db   :  { %p447_p13 = scmp.ne.s32.totalorder %s546_s6, %s446_s20  ;;  %p450_p0 = scmp.lt.u32.totalorder %s446_s20, %s546_s6 }
 0x2dd   :  { %p452_p1 = pnand %p450_p0, %p447_p13 }
 0x2df   :  { %455 = shalt.err (!%p452_p1)
}
 0x2e0   :  { %331 = dma.vmem_to_hbm [thread:$0]  %s329_s18, 512, %s546_s6, [#allocation5]  }
 0x2e1   :  { %458 = dma.done.wait [#allocation5], 512  }
 0x2e2   :  { %459 = vsyncadd [#allocation5], 4294966784 }
 0x2e3   :  { %335 = vsyncpa [#allocation4], 1 }
 0x2e4   :  { %336 = vsyncpa [#allocation5], 1 }

</bundles_post_ra>
